<compile_context>
chip_gen: v7x
topology: tpu7x:2x2x1
jax: 0.10.0
libtpu: 0.0.40
codegen_flags: <defaults>
</compile_context>

<pallas_src>
import functools

import jax
import jax.numpy as jnp
from jax.experimental import pallas as pl
from jax.experimental.pallas import tpu as pltpu

_MiB = 1024 * 1024


def mha_kernel(q_ref, k_ref, v_ref, wqkv_ref, wfc_ref, gamma_ref, beta_ref,
               out_ref, *attn_refs,
               n_head, d_k, d_v, eps, compute_dtype, exact_softmax):
    """One block of b_blk batch elements per grid step.

    q_ref/k_ref/v_ref : (b_blk, L, d_model) VMEM tiles
    wqkv              : (d_model, n_head*(2*d_k + d_v))  = [wq/sqrt(dk)|wk|wv]
    wfc               : (n_head*d_v, d_model)
    gamma/beta        : (1, d_model)
    out_ref           : (b_blk, Lq, d_model)
    attn_refs         : optionally one (b_blk, n_head, Lq, Lk) ref
    """
    b_blk, Lq, d_model = q_ref.shape
    Lk = k_ref.shape[1]
    H = n_head
    cd = compute_dtype
    attn_ref = attn_refs[0] if attn_refs else None

    # ---- flatten batch*seq into the sublane (row) dimension --------------
    rows_q = q_ref[...].reshape(b_blk * Lq, d_model)          # f32 (residual)
    rows_k = k_ref[...].reshape(b_blk * Lk, d_model)
    rows_v = v_ref[...].reshape(b_blk * Lk, d_model)

    nq, nk = b_blk * Lq, b_blk * Lk
    qk_cols, v_cols = H * d_k, H * d_v

    # ---- fused Q/K/V projection: ONE MXU weight push ----------------------
    # Stack the q/k/v rows and slice the diagonal blocks of the result; the
    # off-diagonal columns are free (MXU pads N to 128/256 anyway).
    if nq % 8 == 0 and nk % 8 == 0:
        stacked = jnp.concatenate(
            [rows_q.astype(cd), rows_k.astype(cd), rows_v.astype(cd)], axis=0)
        qkv = jnp.dot(stacked, wqkv_ref[...].astype(cd),
                      preferred_element_type=jnp.float32)     # (3*rows, 96)
        q_all = qkv[:nq, :qk_cols]                            # scale folded in
        k_all = qkv[nq:nq + nk, qk_cols:2 * qk_cols]
        v_all = qkv[nq + nk:nq + 2 * nk, 2 * qk_cols:2 * qk_cols + v_cols]
    else:
        # Fallback when the row blocks are not sublane-aligned for the concat.
        w = wqkv_ref[...].astype(cd)
        q_all = jnp.dot(rows_q.astype(cd), w[:, :qk_cols],
                        preferred_element_type=jnp.float32)
        k_all = jnp.dot(rows_k.astype(cd), w[:, qk_cols:2 * qk_cols],
                        preferred_element_type=jnp.float32)
        v_all = jnp.dot(rows_v.astype(cd), w[:, 2 * qk_cols:2 * qk_cols + v_cols],
                        preferred_element_type=jnp.float32)

    # ---- head-major fused-batch views -------------------------------------
    # Mosaic's dot_general needs a single leading batch dim, so build the
    # (b*H, L, d) layout explicitly (d stays the minor dim).
    qh = q_all.reshape(b_blk, Lq, H, d_k).transpose(0, 2, 1, 3)
    qh = qh.reshape(b_blk * H, Lq, d_k)
    kh = k_all.reshape(b_blk, Lk, H, d_k).transpose(0, 2, 1, 3)
    kh = kh.reshape(b_blk * H, Lk, d_k)
    vh = v_all.reshape(b_blk, Lk, H, d_v).transpose(0, 2, 1, 3)
    vh = vh.reshape(b_blk * H, Lk, d_v)

    # ---- scaled dot-product attention (mask=None path), batched over b*H --
    # 1/sqrt(d_k) is already folded into the wq columns of wqkv.
    scores = jnp.einsum("bqd,bkd->bqk", qh.astype(cd), kh.astype(cd),
                        preferred_element_type=jnp.float32)   # (b*H, Lq, Lk)

    # softmax in f32; exact reciprocal when attn is an external output,
    # (nearly free) EUP approximation otherwise.
    scores = scores - jnp.max(scores, axis=-1, keepdims=True)
    p = jnp.exp(scores)
    den = jnp.sum(p, axis=-1, keepdims=True)
    inv_den = pl.reciprocal(den, approx=not exact_softmax)
    attn = p * inv_den                                        # (b*H, Lq, Lk)

    if attn_ref is not None:
        # Natural layout: pure leading-dim split, no relayout pass.
        attn_ref[...] = attn.reshape(b_blk, H, Lq, Lk)

    # attention output and head merge
    o = jnp.einsum("bqk,bkd->bqd", attn.astype(cd), vh.astype(cd),
                   preferred_element_type=jnp.float32)        # (b*H, Lq, d_v)
    merged = o.reshape(b_blk, H, Lq, d_v).transpose(0, 2, 1, 3)
    merged = merged.reshape(b_blk * Lq, H * d_v)

    proj = jnp.dot(merged.astype(cd), wfc_ref[...].astype(cd),
                   preferred_element_type=jnp.float32)        # (bLq, d_model)

    # ---- residual + LayerNorm (eps=1e-6, biased variance) in f32 ----------
    resid = proj + rows_q
    mean = jnp.mean(resid, axis=-1, keepdims=True)
    var = jnp.mean((resid - mean) ** 2, axis=-1, keepdims=True)
    normed = (resid - mean) * jax.lax.rsqrt(var + eps)
    out = normed * gamma_ref[...] + beta_ref[...]
    out_ref[...] = out.reshape(b_blk, Lq, d_model).astype(out_ref.dtype)


def prepare_params(params, *, n_head, d_k):
    """One-time parameter preparation (not per call):
    fold 1/sqrt(d_k) into wq and concatenate the three projection weights."""
    del n_head  # layout is already (d_model, H*d) column-major per head
    scale = 1.0 / (float(d_k) ** 0.5)
    wqkv = jnp.concatenate(
        [params["wq"] * scale, params["wk"], params["wv"]], axis=1)
    return {"wqkv": wqkv, "wfc": params["wfc"],
            "gamma": params["gamma"], "beta": params["beta"]}


def _block_vmem_bytes(b_blk, Lq, Lk, d_model, n_head, return_attn):
    """Double-buffered per-step VMEM footprint of the blocked tensors (f32)."""
    qkv_in = b_blk * (Lq + 2 * Lk) * d_model * 4
    out = b_blk * Lq * d_model * 4
    attn = b_blk * n_head * Lq * Lk * 4 if return_attn else 0
    return 2 * (qkv_in + out + attn)


def _auto_b_blk(B, Lq, Lk, d_model, n_head, return_attn, vmem_budget):
    """Pick b_blk so that (a) the grid has >= 2 steps when B allows (pipeline
    overlap; both v7x TensorCores busy), (b) b_blk*L reaches ~256 rows when
    possible, (c) the double-buffered blocks (incl. attn) fit the VMEM budget."""
    divisors = [d for d in range(1, B + 1) if B % d == 0]
    fitting = [d for d in divisors
               if 3 * _block_vmem_bytes(d, Lq, Lk, d_model, n_head, return_attn)
               <= vmem_budget] or [1]
    multi_step = [d for d in fitting if B // d >= 2]
    cands = multi_step if multi_step else fitting
    filled = [d for d in cands if d * min(Lq, Lk) >= 256]
    return min(filled) if filled else max(cands)


def multi_head_attention(q, k, v, prepared, *, n_head, d_k, d_v, eps=1e-6,
                         b_blk=None, compute_dtype=jnp.float32,
                         return_attn=True):
    """q, k, v: (B, L, d_model) float32.  `prepared` comes from prepare_params().

    Returns (out, attn) if return_attn else out.

    compute_dtype=jnp.bfloat16 gives higher MXU throughput on v5e, v6e and v7x
    alike (f32 accumulation, f32 softmax/LayerNorm are preserved); keep
    jnp.float32 for exact-f32 numerics.
    """
    B, Lq, d_model = q.shape
    Lk = k.shape[1]
    wqkv, wfc = prepared["wqkv"], prepared["wfc"]
    gamma, beta = prepared["gamma"], prepared["beta"]

    # Conservative budget for v7x's 64 MiB physical VMEM; also fine on v5e/v6e.
    vmem_budget = 48 * _MiB
    if b_blk is None:
        b_blk = _auto_b_blk(B, Lq, Lk, d_model, n_head, return_attn, vmem_budget)
    assert B % b_blk == 0, "b_blk must divide B"
    num_blocks = B // b_blk

    vmem_limit = int(min(vmem_budget,
                         max(32 * _MiB,
                             4 * _block_vmem_bytes(b_blk, Lq, Lk, d_model,
                                                   n_head, return_attn))))

    kernel = functools.partial(
        mha_kernel, n_head=n_head, d_k=d_k, d_v=d_v, eps=eps,
        compute_dtype=compute_dtype, exact_softmax=return_attn)

    in_specs = [
        pl.BlockSpec((b_blk, Lq, d_model), lambda b: (b, 0, 0)),   # q
        pl.BlockSpec((b_blk, Lk, d_model), lambda b: (b, 0, 0)),   # k
        pl.BlockSpec((b_blk, Lk, d_model), lambda b: (b, 0, 0)),   # v
        # Constant index_map -> fetched once by the pipeline; the weights are
        # tiny here so their double-buffer footprint is negligible.
        pl.BlockSpec(wqkv.shape, lambda b: (0, 0)),                # [wq|wk|wv]
        pl.BlockSpec(wfc.shape, lambda b: (0, 0)),                 # fc
        pl.BlockSpec(gamma.shape, lambda b: (0, 0)),               # ln gamma
        pl.BlockSpec(beta.shape, lambda b: (0, 0)),                # ln beta
    ]

    out_spec_o = pl.BlockSpec((b_blk, Lq, d_model), lambda b: (b, 0, 0))
    if return_attn:
        out_shape = (
            jax.ShapeDtypeStruct((B, Lq, d_model), jnp.float32),
            jax.ShapeDtypeStruct((B, n_head, Lq, Lk), jnp.float32),
        )
        out_specs = [
            out_spec_o,
            pl.BlockSpec((b_blk, n_head, Lq, Lk), lambda b: (b, 0, 0, 0)),
        ]
    else:
        out_shape = jax.ShapeDtypeStruct((B, Lq, d_model), jnp.float32)
        out_specs = out_spec_o

    grid_spec = pltpu.PrefetchScalarGridSpec(
        num_scalar_prefetch=0,
        grid=(num_blocks,),
        in_specs=in_specs,
        out_specs=out_specs,
    )

    return pl.pallas_call(
        kernel,
        grid_spec=grid_spec,
        out_shape=out_shape,
        compiler_params=pltpu.CompilerParams(
            dimension_semantics=("parallel",),
            vmem_limit_bytes=vmem_limit),
    )(q, k, v, wqkv, wfc, gamma, beta)


def reference(q, k, v, params, *, n_head, d_k, d_v, eps=1e-6):
    """Pure-JAX reference mirroring the PyTorch forward."""
    B, Lq, d_model = q.shape
    Lk = k.shape[1]
    qp = (q @ params["wq"]).reshape(B, Lq, n_head, d_k).transpose(0, 2, 1, 3)
    kp = (k @ params["wk"]).reshape(B, Lk, n_head, d_k).transpose(0, 2, 1, 3)
    vp = (v @ params["wv"]).reshape(B, Lk, n_head, d_v).transpose(0, 2, 1, 3)
    scores = jnp.einsum("bhqd,bhkd->bhqk", qp / (d_k ** 0.5), kp)
    attn = jax.nn.softmax(scores, axis=-1)
    o = jnp.einsum("bhqk,bhkd->bhqd", attn, vp).transpose(0, 2, 1, 3).reshape(B, Lq, -1)
    o = o @ params["wfc"] + q
    mean = o.mean(-1, keepdims=True)
    var = ((o - mean) ** 2).mean(-1, keepdims=True)
    o = (o - mean) / jnp.sqrt(var + eps) * params["gamma"][0] + params["beta"][0]
    return o, attn


if __name__ == "__main__":
    # Small shapes implied by the module: (batch, seq, d_model)
    B, L, d_model = 2, 8, 32
    n_head, d_k, d_v = 4, 8, 8

    key = jax.random.PRNGKey(0)
    kq, kk, kv, kwq, kwk, kwv, kwfc = jax.random.split(key, 7)

    q = jax.random.normal(kq, (B, L, d_model), dtype=jnp.float32)
    k = jax.random.normal(kk, (B, L, d_model), dtype=jnp.float32)
    v = jax.random.normal(kv, (B, L, d_model), dtype=jnp.float32)

    scale = 0.1
    params = {
        "wq": scale * jax.random.normal(kwq, (d_model, n_head * d_k), dtype=jnp.float32),
        "wk": scale * jax.random.normal(kwk, (d_model, n_head * d_k), dtype=jnp.float32),
        "wv": scale * jax.random.normal(kwv, (d_model, n_head * d_v), dtype=jnp.float32),
        "wfc": scale * jax.random.normal(kwfc, (n_head * d_v, d_model), dtype=jnp.float32),
        "gamma": jnp.ones((1, d_model), dtype=jnp.float32),
        "beta": jnp.zeros((1, d_model), dtype=jnp.float32),
    }

    # One-time parameter prep: scale fold + QKV weight concat.
    prepared = prepare_params(params, n_head=n_head, d_k=d_k)

    # Full path (returns the attention probabilities, exact softmax recip).
    out, attn = multi_head_attention(q, k, v, prepared,
                                     n_head=n_head, d_k=d_k, d_v=d_v,
                                     return_attn=True)
    # Attn-free path (skips the second output's HBM writeback).
    out_noattn = multi_head_attention(q, k, v, prepared,
                                      n_head=n_head, d_k=d_k, d_v=d_v,
                                      return_attn=False)
    jax.block_until_ready((out, attn, out_noattn))

    out_ref, attn_ref = reference(q, k, v, params,
                                  n_head=n_head, d_k=d_k, d_v=d_v)

    # Tolerance accounts for MXU f32 multi-pass rounding.
    assert jnp.allclose(out, out_ref, atol=5e-3, rtol=5e-3), "output mismatch"
    assert jnp.allclose(attn, attn_ref, atol=5e-3, rtol=5e-3), "attn mismatch"
    # approx-reciprocal softmax in the attn-free variant -> same relaxed tol
    assert jnp.allclose(out_noattn, out_ref, atol=5e-3, rtol=5e-3), \
        "output (no-attn) mismatch"

    print("KERNEL_OK")
</pallas_src>

<mosaic_0001>
module attributes {stable_mosaic.version = 11 : i64} {
  func.func @mha_kernel(%arg0: i32, %arg1: memref<1x8x32xf32, #tpu.memory_space<vmem>>, %arg2: memref<1x8x32xf32, #tpu.memory_space<vmem>>, %arg3: memref<1x8x32xf32, #tpu.memory_space<vmem>>, %arg4: memref<32x96xf32, #tpu.memory_space<vmem>>, %arg5: memref<32x32xf32, #tpu.memory_space<vmem>>, %arg6: memref<1x32xf32, #tpu.memory_space<vmem>>, %arg7: memref<1x32xf32, #tpu.memory_space<vmem>>, %arg8: memref<1x8x32xf32, #tpu.memory_space<vmem>>, %arg9: memref<1x4x8x8xf32, #tpu.memory_space<vmem>>) attributes {dimension_semantics = [#tpu.dimension_semantics<parallel>], iteration_bounds = array<i64: 2>, scalar_prefetch = 0 : i64, scratch_operands = 0 : i64, tpu.core_type = #tpu.core_type<tc>, window_params = [{transform_indices = @transform_0, window_bounds = array<i64: 1, 8, 32>}, {transform_indices = @transform_1, window_bounds = array<i64: 1, 8, 32>}, {transform_indices = @transform_2, window_bounds = array<i64: 1, 8, 32>}, {pipeline_mode = #tpu.pipeline_mode<synchronous>, transform_indices = @transform_3, window_bounds = array<i64: 32, 96>}, {pipeline_mode = #tpu.pipeline_mode<synchronous>, transform_indices = @transform_4, window_bounds = array<i64: 32, 32>}, {pipeline_mode = #tpu.pipeline_mode<synchronous>, transform_indices = @transform_5, window_bounds = array<i64: 1, 32>}, {pipeline_mode = #tpu.pipeline_mode<synchronous>, transform_indices = @transform_6, window_bounds = array<i64: 1, 32>}, {transform_indices = @transform_7, window_bounds = array<i64: 1, 8, 32>}, {transform_indices = @transform_8, window_bounds = array<i64: 1, 4, 8, 8>}]} {
    %c0 = arith.constant 0 : index
    %c0_0 = arith.constant 0 : index
    %c0_1 = arith.constant 0 : index
    %0 = vector.load %arg1[%c0, %c0_0, %c0_1] : memref<1x8x32xf32, #tpu.memory_space<vmem>>, vector<1x8x32xf32>
    %1 = vector.shape_cast %0 : vector<1x8x32xf32> to vector<8x32xf32>
    %c0_2 = arith.constant 0 : index
    %c0_3 = arith.constant 0 : index
    %c0_4 = arith.constant 0 : index
    %2 = vector.load %arg2[%c0_2, %c0_3, %c0_4] : memref<1x8x32xf32, #tpu.memory_space<vmem>>, vector<1x8x32xf32>
    %3 = vector.shape_cast %2 : vector<1x8x32xf32> to vector<8x32xf32>
    %c0_5 = arith.constant 0 : index
    %c0_6 = arith.constant 0 : index
    %c0_7 = arith.constant 0 : index
    %4 = vector.load %arg3[%c0_5, %c0_6, %c0_7] : memref<1x8x32xf32, #tpu.memory_space<vmem>>, vector<1x8x32xf32>
    %5 = vector.shape_cast %4 : vector<1x8x32xf32> to vector<8x32xf32>
    %6 = tpu.concatenate %1, %3, %5 in 0 : vector<8x32xf32>, vector<8x32xf32>, vector<8x32xf32> -> vector<24x32xf32>
    %c0_8 = arith.constant 0 : index
    %c0_9 = arith.constant 0 : index
    %7 = vector.load %arg4[%c0_8, %c0_9] : memref<32x96xf32, #tpu.memory_space<vmem>>, vector<32x96xf32>
    %cst = arith.constant dense<0.000000e+00> : vector<24x96xf32>
    %8 = tpu.matmul %6, %7, %cst {dimension_numbers = #tpu.dot_dimension_numbers<[1], [0], [0], [1], [0, 0, 1, 1], [], []>} : vector<24x32xf32>, vector<32x96xf32>, vector<24x96xf32> -> vector<24x96xf32>
    %9 = vector.extract_strided_slice %8 {offsets = [0, 0], sizes = [8, 32], strides = [1, 1]} : vector<24x96xf32> to vector<8x32xf32>
    %10 = vector.extract_strided_slice %8 {offsets = [8, 32], sizes = [8, 32], strides = [1, 1]} : vector<24x96xf32> to vector<8x32xf32>
    %11 = vector.extract_strided_slice %8 {offsets = [16, 64], sizes = [8, 32], strides = [1, 1]} : vector<24x96xf32> to vector<8x32xf32>
    %12 = vector.shape_cast %9 : vector<8x32xf32> to vector<1x8x4x8xf32>
    %13 = tpu.transpose %12, [0, 2, 1, 3] : vector<1x8x4x8xf32> -> vector<1x4x8x8xf32>
    %14 = vector.shape_cast %13 : vector<1x4x8x8xf32> to vector<4x8x8xf32>
    %15 = vector.shape_cast %10 : vector<8x32xf32> to vector<1x8x4x8xf32>
    %16 = tpu.transpose %15, [0, 2, 1, 3] : vector<1x8x4x8xf32> -> vector<1x4x8x8xf32>
    %17 = vector.shape_cast %16 : vector<1x4x8x8xf32> to vector<4x8x8xf32>
    %18 = vector.shape_cast %11 : vector<8x32xf32> to vector<1x8x4x8xf32>
    %19 = tpu.transpose %18, [0, 2, 1, 3] : vector<1x8x4x8xf32> -> vector<1x4x8x8xf32>
    %20 = vector.shape_cast %19 : vector<1x4x8x8xf32> to vector<4x8x8xf32>
    "tpu.trace_start"() <{level = 10 : i32, message = "bqd,bkd->bqk"}> : () -> ()
    %cst_10 = arith.constant dense<0.000000e+00> : vector<4x8x8xf32>
    %21 = tpu.matmul %14, %17, %cst_10 {dimension_numbers = #tpu.dot_dimension_numbers<[2], [2], [1], [1], [0, 0, 0, 1, 1, 1], [0], [0]>} : vector<4x8x8xf32>, vector<4x8x8xf32>, vector<4x8x8xf32> -> vector<4x8x8xf32>
    "tpu.trace_stop"() : () -> ()
    %cst_11 = arith.constant dense<0xFF800000> : vector<4x8xf32>
    %22 = vector.multi_reduction <maximumf>, %21, %cst_11 [2] : vector<4x8x8xf32> to vector<4x8xf32>
    %23 = vector.shape_cast %22 : vector<4x8xf32> to vector<4x8x1xf32>
    %24 = vector.broadcast %23 : vector<4x8x1xf32> to vector<4x8x8xf32>
    %25 = arith.subf %21, %24 : vector<4x8x8xf32>
    %26 = math.exp %25 : vector<4x8x8xf32>
    %cst_12 = arith.constant dense<0.000000e+00> : vector<4x8xf32>
    %27 = vector.multi_reduction <add>, %26, %cst_12 [2] : vector<4x8x8xf32> to vector<4x8xf32>
    %28 = vector.shape_cast %27 : vector<4x8xf32> to vector<4x8x1xf32>
    %29 = tpu.reciprocal %28 : vector<4x8x1xf32> -> vector<4x8x1xf32>
    %30 = vector.broadcast %29 : vector<4x8x1xf32> to vector<4x8x8xf32>
    %31 = arith.mulf %26, %30 : vector<4x8x8xf32>
    %32 = vector.shape_cast %31 : vector<4x8x8xf32> to vector<1x4x8x8xf32>
    %c0_13 = arith.constant 0 : index
    %c0_14 = arith.constant 0 : index
    %c0_15 = arith.constant 0 : index
    %c0_16 = arith.constant 0 : index
    %33 = vector.load %arg9[%c0_13, %c0_14, %c0_15, %c0_16] : memref<1x4x8x8xf32, #tpu.memory_space<vmem>>, vector<1x4x8x8xf32>
    tpu.vector_store %arg9[%c0_13, %c0_14, %c0_15, %c0_16], %32 {strides = array<i32>} : memref<1x4x8x8xf32, #tpu.memory_space<vmem>>, vector<1x4x8x8xf32>,
    "tpu.trace_start"() <{level = 10 : i32, message = "bqk,bkd->bqd"}> : () -> ()
    %cst_17 = arith.constant dense<0.000000e+00> : vector<4x8x8xf32>
    %34 = tpu.matmul %31, %20, %cst_17 {dimension_numbers = #tpu.dot_dimension_numbers<[2], [1], [1], [2], [0, 0, 0, 1, 1, 2], [0], [0]>} : vector<4x8x8xf32>, vector<4x8x8xf32>, vector<4x8x8xf32> -> vector<4x8x8xf32>
    "tpu.trace_stop"() : () -> ()
    %35 = vector.shape_cast %34 : vector<4x8x8xf32> to vector<1x4x8x8xf32>
    %36 = tpu.transpose %35, [0, 2, 1, 3] : vector<1x4x8x8xf32> -> vector<1x8x4x8xf32>
    %37 = vector.shape_cast %36 : vector<1x8x4x8xf32> to vector<8x32xf32>
    %c0_18 = arith.constant 0 : index
    %c0_19 = arith.constant 0 : index
    %38 = vector.load %arg5[%c0_18, %c0_19] : memref<32x32xf32, #tpu.memory_space<vmem>>, vector<32x32xf32>
    %cst_20 = arith.constant dense<0.000000e+00> : vector<8x32xf32>
    %39 = tpu.matmul %37, %38, %cst_20 {dimension_numbers = #tpu.dot_dimension_numbers<[1], [0], [0], [1], [0, 0, 1, 1], [], []>} : vector<8x32xf32>, vector<32x32xf32>, vector<8x32xf32> -> vector<8x32xf32>
    %40 = arith.addf %39, %1 : vector<8x32xf32>
    %cst_21 = arith.constant dense<0.000000e+00> : vector<8xf32>
    %41 = vector.multi_reduction <add>, %40, %cst_21 [1] : vector<8x32xf32> to vector<8xf32>
    %42 = vector.shape_cast %41 : vector<8xf32> to vector<8x1xf32>
    %cst_22 = arith.constant 3.200000e+01 : f32
    %43 = vector.broadcast %cst_22 : f32 to vector<8x1xf32>
    %44 = arith.divf %42, %43 : vector<8x1xf32>
    %45 = vector.broadcast %44 : vector<8x1xf32> to vector<8x32xf32>
    %46 = arith.subf %40, %45 : vector<8x32xf32>
    %47 = arith.mulf %46, %46 : vector<8x32xf32>
    %cst_23 = arith.constant dense<0.000000e+00> : vector<8xf32>
    %48 = vector.multi_reduction <add>, %47, %cst_23 [1] : vector<8x32xf32> to vector<8xf32>
    %49 = vector.shape_cast %48 : vector<8xf32> to vector<8x1xf32>
    %cst_24 = arith.constant 3.200000e+01 : f32
    %50 = vector.broadcast %cst_24 : f32 to vector<8x1xf32>
    %51 = arith.divf %49, %50 : vector<8x1xf32>
    %52 = vector.broadcast %44 : vector<8x1xf32> to vector<8x32xf32>
    %53 = arith.subf %40, %52 : vector<8x32xf32>
    %cst_25 = arith.constant 9.99999997E-7 : f32
    %54 = vector.broadcast %cst_25 : f32 to vector<8x1xf32>
    %55 = arith.addf %51, %54 : vector<8x1xf32>
    %56 = math.rsqrt %55 : vector<8x1xf32>
    %57 = vector.broadcast %56 : vector<8x1xf32> to vector<8x32xf32>
    %58 = arith.mulf %53, %57 : vector<8x32xf32>
    %c0_26 = arith.constant 0 : index
    %c0_27 = arith.constant 0 : index
    %59 = vector.load %arg6[%c0_26, %c0_27] : memref<1x32xf32, #tpu.memory_space<vmem>>, vector<1x32xf32>
    %60 = vector.broadcast %59 : vector<1x32xf32> to vector<8x32xf32>
    %61 = arith.mulf %58, %60 : vector<8x32xf32>
    %c0_28 = arith.constant 0 : index
    %c0_29 = arith.constant 0 : index
    %62 = vector.load %arg7[%c0_28, %c0_29] : memref<1x32xf32, #tpu.memory_space<vmem>>, vector<1x32xf32>
    %63 = vector.broadcast %62 : vector<1x32xf32> to vector<8x32xf32>
    %64 = arith.addf %61, %63 : vector<8x32xf32>
    %65 = vector.shape_cast %64 : vector<8x32xf32> to vector<1x8x32xf32>
    %c0_30 = arith.constant 0 : index
    %c0_31 = arith.constant 0 : index
    %c0_32 = arith.constant 0 : index
    %66 = vector.load %arg8[%c0_30, %c0_31, %c0_32] : memref<1x8x32xf32, #tpu.memory_space<vmem>>, vector<1x8x32xf32>
    tpu.vector_store %arg8[%c0_30, %c0_31, %c0_32], %65 {strides = array<i32>} : memref<1x8x32xf32, #tpu.memory_space<vmem>>, vector<1x8x32xf32>,
    return
  }
  func.func @transform_0(%arg0: i32) -> (i32, i32, i32) {
    %c0_i32 = arith.constant 0 : i32
    %c0_i32_0 = arith.constant 0 : i32
    %c0_i32_1 = arith.constant 0 : i32
    return %arg0, %c0_i32, %c0_i32_0 : i32, i32, i32
  }
  func.func @transform_1(%arg0: i32) -> (i32, i32, i32) {
    %c0_i32 = arith.constant 0 : i32
    %c0_i32_0 = arith.constant 0 : i32
    %c0_i32_1 = arith.constant 0 : i32
    return %arg0, %c0_i32, %c0_i32_0 : i32, i32, i32
  }
  func.func @transform_2(%arg0: i32) -> (i32, i32, i32) {
    %c0_i32 = arith.constant 0 : i32
    %c0_i32_0 = arith.constant 0 : i32
    %c0_i32_1 = arith.constant 0 : i32
    return %arg0, %c0_i32, %c0_i32_0 : i32, i32, i32
  }
  func.func @transform_3(%arg0: i32) -> (i32, i32) {
    %c0_i32 = arith.constant 0 : i32
    %c0_i32_0 = arith.constant 0 : i32
    %c0_i32_1 = arith.constant 0 : i32
    return %c0_i32, %c0_i32_0 : i32, i32
  }
  func.func @transform_4(%arg0: i32) -> (i32, i32) {
    %c0_i32 = arith.constant 0 : i32
    %c0_i32_0 = arith.constant 0 : i32
    %c0_i32_1 = arith.constant 0 : i32
    return %c0_i32, %c0_i32_0 : i32, i32
  }
  func.func @transform_5(%arg0: i32) -> (i32, i32) {
    %c0_i32 = arith.constant 0 : i32
    %c0_i32_0 = arith.constant 0 : i32
    %c0_i32_1 = arith.constant 0 : i32
    return %c0_i32, %c0_i32_0 : i32, i32
  }
  func.func @transform_6(%arg0: i32) -> (i32, i32) {
    %c0_i32 = arith.constant 0 : i32
    %c0_i32_0 = arith.constant 0 : i32
    %c0_i32_1 = arith.constant 0 : i32
    return %c0_i32, %c0_i32_0 : i32, i32
  }
  func.func @transform_7(%arg0: i32) -> (i32, i32, i32) {
    %c0_i32 = arith.constant 0 : i32
    %c0_i32_0 = arith.constant 0 : i32
    %c0_i32_1 = arith.constant 0 : i32
    return %arg0, %c0_i32, %c0_i32_0 : i32, i32, i32
  }
  func.func @transform_8(%arg0: i32) -> (i32, i32, i32, i32) {
    %c0_i32 = arith.constant 0 : i32
    %c0_i32_0 = arith.constant 0 : i32
    %c0_i32_1 = arith.constant 0 : i32
    %c0_i32_2 = arith.constant 0 : i32
    return %arg0, %c0_i32, %c0_i32_0, %c0_i32_1 : i32, i32, i32, i32
  }
}

</mosaic_0001>

<bundles_post_ra>
// kernel: tpu_custom_call.1
= control target key start
LH: loop header
LB: loop body
LE: loop exit
PB: predicated region body
PF: predicated region fallthrough
CT: control target
= control target key end

     0   :  { %s3212_s0 = inlined_call_operand.hbm [shape: f32[2,8,32], index: 0, kind: input, shape index: {}]   ;;  %s3213_s1 = inlined_call_operand.hbm [shape: f32[2,8,32], index: 1, kind: input, shape index: {}]   ;;  %s3214_s2 = inlined_call_operand.hbm [shape: f32[2,8,32], index: 2, kind: input, shape index: {}]   ;;  %s3215_s3 = inlined_call_operand.hbm [shape: f32[32,96], index: 3, kind: input, shape index: {}]   ;;  %s3216_s4 = inlined_call_operand.hbm [shape: f32[32,32], index: 4, kind: input, shape index: {}]   ;;  %s3217_s5 = inlined_call_operand.vmem [shape: f32[1,32], index: 5, kind: input, shape index: {}]   ;;  %s3218_s6 = inlined_call_operand.vmem [shape: f32[1,32], index: 6, kind: input, shape index: {}]   ;;  %s3219_s7 = inlined_call_operand.hbm [shape: f32[2,8,32], index: 7, kind: output, shape index: {0}]   ;;  %s3220_s8 = inlined_call_operand.hbm [shape: f32[2,4,8,8], index: 8, kind: output, shape index: {1}]  }
   0x1   :  { %3239 = sst [smem:[#allocation23_spill]] %s3213_s1 }
   0x2   :  { %3240 = sst [smem:[#allocation24_spill]] %s3215_s3 }
   0x3   :  { %14 = vsyncpa [#allocation3], 0 }
   0x4   :  { %16 = vsyncpa [#allocation3 + $0x1], 0 }
   0x5   :  { %17 = vsyncpa [#allocation6], 0 }
   0x6   :  { %19 = vsyncpa [#allocation6 + $0x1], 0 }
   0x7   :  { %20 = vsyncpa [#allocation9], 0 }
   0x8   :  { %21 = vsyncpa [#allocation4], 0 }
   0x9   :  { %23 = vsyncpa [#allocation4 + $0x1], 0 }
   0xa   :  { %24 = vsyncpa [#allocation13], 0 }
   0xb   :  { %26 = vsyncpa [#allocation13 + $0x1], 0  ;;  %s2689_s27 = smov 0   ;;  %s2691_s28 = smov 0  }
   0xc   :  { %s2693_s29 = smov 0   ;;  %s2695_s30 = smov 0  }
   0xd LB: > { %3241 = sst [smem:[#allocation19_spill]] %s2619_s30  ;;  %s2710_s9 = sadd.s32 4294967295, %s2619_s30   ;;  %s2619_s30 = sphi %s2695_s30, %s3273_s30   ;;  %s2615_s29 = sphi %s2693_s29, %s3277_s29   ;;  %s2611_s28 = sphi %s2691_s28, %s3276_s28   ;;  %s2607_s27 = sphi %s2689_s27, %s3275_s27  }
   0xe   : > { %s2090_s10 = sadd.s32 4294967294, %s2619_s30   ;;  %p52_p0 = scmp.ne.s32.totalorder %s2611_s28, %s2607_s27 }
   0xf   : > { %p3221_p1 = scmp.eq.s32.totalorder %s2710_s9, 0  ;;  %p218_p3 = scmp.eq.s32.totalorder %s2090_s10, 1 }
  0x10   : > { %p2091_p5 = scmp.ge.s32.totalorder %s2619_s30, 1  ;;  %p251_p7 = scmp.lt.s32.totalorder %s2619_s30, 3 }
  0x11   : > { %p2719_p4 = por %p3221_p1, %p52_p0  ;;  %p2724_p6 = por %p218_p3, %p52_p0 }
  0x12   : > { %p2729_p8 = pnand %p2091_p5, %p251_p7  ;;  %s2621_s14 = smov [#allocation8]  }
  0x13   : > { %s3242_s11 = scalar_select %p2719_p4, 1, 0 }
  0x14   : > { %s3243_s12 = scalar_select %p2724_p6, 1, 0 }
  0x15   : > { %s3245_s13 = scalar_select %p2729_p8, 1, 0 }
  0x16   : > { %3244 = sst [smem:[#allocation20_spill]] %s3243_s12  ;;  %s263_s15 = sshll.u32 %s2621_s14, 4  ;;  %s2733_s15 = int_to_ptr.vmem [resolvable:$true] %s263_s15 }
  0x17   : > { %p2269_p9 = pneg %p2729_p8  ;;  %s2745_s17 = sadd.s32 1, %s2619_s30  }
  0x18   : > { %3247 = sst [smem:[#allocation21_spill]] %s2745_s17  ;;  %s39_s18 = sadd.s32 1, %s2615_s29 }
  0x19   : > { %p2740_p11 = pnand %p2269_p9, %p3221_p1  ;;  %s36_s19 = ssub.s32 %s2619_s30, %s2745_s17 }
  0x1a   : > { %s3248_s3 = sld [smem:[#allocation24_spill]] }
  0x1b   : > { %s3246_s16 = scalar_select %p2740_p11, 1, 0 }
  0x1c   : > { %p3228_p13 = pneg %p2740_p11 }
  0x20   : > { %s2367_s22 = scalar_lea.hbm %s3248_s3, 512 }
  0x21   : > { %p2368_p12 = scmp.ne.s32.totalorder %s3248_s3, %s2367_s22  ;;  %p2374_p5 = scmp.lt.u32.totalorder %s2367_s22, %s3248_s3 }
  0x23   : > { %p2370_p0 = pnand %p3228_p13, %p2368_p12 }
  0x25   : > { %p2371_p3 = pneg %p2370_p0 }
  0x27   : > { %p2376_p7 = pnand %p2374_p5, %p2371_p3 }
  0x29   : > { %2379 = shalt.err (!%p2376_p7)
}
  0x2a   : > { %s2380_s10 = scalar_lea.vmem %s2733_s15, 512  ;;  %p2388_p2 = scmp.lt.s32.totalorder %s2733_s15, %s2733_s15 }
  0x2b   : > { %p2381_p9 = scmp.ne.s32.totalorder %s2733_s15, %s2380_s10  ;;  %p2389_p12 = scmp.lt.s32.totalorder %s2380_s10, %s2380_s10 }
  0x2d   : > { %p2383_p10 = pnand %p2381_p9, %p3228_p13  ;;  %p2390_p0 = por %p2389_p12, %p2388_p2 }
  0x2f   : > { %p2384_p1 = pneg %p2383_p10 }
  0x31   : > { %p2391_p6 = pnand %p2390_p0, %p2384_p1 }
  0x33   : > { %2394 = shalt.err (!%p2391_p6)
}
  0x34   : > { %s3222_s14 = smov 128   ;;  %s3223_s20 = smov 8  }
  0x35   : > { %2272 = dma.hbm_to_vmem [thread:$0]  (!%p2740_p11), %s3248_s3, 512, %s2733_s15, [#allocation9], %s3222_s14, %s3222_s14, %s3223_s20  }
  0x36   : > { %p37_p1 = scmp.eq.s32.totalorder %s36_s19, 0  ;;  %p46_p2 = scmp.ne.s32.totalorder %s2615_s29, %s2611_s28 }
  0x37   : > { %p47_p6 = scmp.eq.s32.totalorder %s2619_s30, 0  ;;  %p2295_p10 = scmp.lt.s32.totalorder %s2619_s30, 2 }
  0x38   : > { %s2785_s23 = scalar_select %p37_p1, %s2615_s29, %s39_s18  }
  0x39   : > { %p48_p3 = por %p47_p6, %p46_p2  ;;  %p3250_p5 = scmp.eq.s32.totalorder %s2710_s9, 1 }
  0x3a   : > { %3249 = sst [smem:[#allocation22_spill]] %s2785_s23  ;;  %s3224_s25 = sand.u32 1, %s2615_s29  }
  0x3b   : > { %p2789_p7 = por %p3250_p5, %p46_p2  ;;  %s2795_s26 = sshll.u32 %s2619_s30, 7 }
  0x3c   : > { %s2799_s10 = sshll.u32 %s3224_s25, 3  ;;  %p2801_p9 = pnand %p2295_p10, %p48_p3 }
  0x3d   : > { %s3251_s24 = scalar_select %p2789_p7, 1, 0 }
  0x3e   : > { %s3252_s15 = scalar_select %p2801_p9, 1, 0 }
  0x3f   : > { %s314_s18 = sand.u32 1, %s2619_s30   ;;  %s3253_s1 = sld [smem:[#allocation23_spill]] }
  0x40   : > { %s318_s14 = scalar_lea.vmem [#allocation5], %s2799_s10  ;;  %s2815_s25 = scalar_lea.sflag [#allocation6], %s314_s18 }
  0x41   : > { %s325_s20 = sshll.u32 %s318_s14, 4  ;;  %p2821_p0 = pneg %p2801_p9  ;;  %s2813_s20 = int_to_ptr.vmem [resolvable:$true] %s325_s20 }
  0x43   : > { %s3254_s23 = scalar_select %p2821_p0, 1, 0 }
  0x45   : > { %s2810_s22 = scalar_lea.hbm %s3253_s1, %s2795_s26  ;;  %s2400_s17 = scalar_lea.hbm %s3253_s1, 256 }
  0x46   : > { %s2395_s3 = scalar_lea.hbm %s2810_s22, 128  ;;  %p2401_p6 = scmp.lt.u32.totalorder %s2810_s22, %s3253_s1 }
  0x47   : > { %p2396_p12 = scmp.ne.s32.totalorder %s2810_s22, %s2395_s3  ;;  %p2402_p10 = scmp.lt.u32.totalorder %s2400_s17, %s2395_s3 }
  0x48   : > { %p2404_p5 = scmp.lt.u32.totalorder %s2395_s3, %s2810_s22 }
  0x49   : > { %p2398_p1 = pnand %p2821_p0, %p2396_p12  ;;  %p2403_p3 = por %p2402_p10, %p2401_p6 }
  0x4b   : > { %p2399_p2 = pneg %p2398_p1  ;;  %p2405_p13 = por %p2404_p5, %p2403_p3 }
  0x4d   : > { %p2406_p7 = pnand %p2405_p13, %p2399_p2 }
  0x4f   : > { %2409 = shalt.err (!%p2406_p7)
}
  0x50   : > { %s2410_s18 = scalar_lea.vmem %s2813_s20, 128  ;;  %s2624_s19 = smov [#allocation5]  }
  0x51   : > { %p2411_p12 = scmp.ne.s32.totalorder %s2813_s20, %s2410_s18  ;;  %s2415_s21 = sshll.u32 %s2624_s19, 4  ;;  %s2416_s21 = int_to_ptr.vmem [resolvable:$false] %s2415_s21 }
  0x52   : > { %s2417_s30 = scalar_lea.vmem %s2416_s21, 256  ;;  %p2418_p8 = scmp.lt.s32.totalorder %s2813_s20, %s2416_s21 }
  0x53   : > { %p2413_p1 = pnand %p2411_p12, %p2821_p0  ;;  %p2419_p11 = scmp.lt.s32.totalorder %s2417_s30, %s2410_s18 }
  0x55   : > { %p2414_p4 = pneg %p2413_p1  ;;  %p2420_p6 = por %p2419_p11, %p2418_p8 }
  0x57   : > { %p2421_p10 = pnand %p2420_p6, %p2414_p4 }
  0x59   : > { %2424 = shalt.err (!%p2421_p10)
}
  0x5a   : > { %2282 = dma.hbm_to_vmem [thread:$0]  (!%p2801_p9), %s2810_s22, 128, %s2813_s20, %s2815_s25  }
  0x5b   : > { %s2625_s3 = smov [#allocation10]   ;;  %s2425_s19 = scalar_lea.hbm %s3216_s4, 512 }
  0x5c   : > { %s276_s17 = sshll.u32 %s2625_s3, 4  ;;  %p2426_p8 = scmp.ne.s32.totalorder %s3216_s4, %s2425_s19  ;;  %s277_s17 = int_to_ptr.vmem [resolvable:$true] %s276_s17 }
  0x5d   : > { %p3255_p4 = scmp.ne.s32.totalorder %s3246_s16, 0  ;;  %p2432_p2 = scmp.lt.u32.totalorder %s2425_s19, %s3216_s4 }
  0x5f   : > { %p3256_p11 = pneg %p3255_p4 }
  0x61   : > { %p2428_p13 = pnand %p2426_p8, %p3256_p11 }
  0x63   : > { %p2429_p7 = pneg %p2428_p13 }
  0x65   : > { %p2434_p3 = pnand %p2432_p2, %p2429_p7 }
  0x67   : > { %2437 = shalt.err (!%p2434_p3)
}
  0x68   : > { %s2438_s20 = scalar_lea.vmem %s277_s17, 512  ;;  %p3257_p12 = pmov %p3256_p11 }
  0x69   : > { %p2439_p5 = scmp.ne.s32.totalorder %s277_s17, %s2438_s20  ;;  %p2446_p10 = scmp.lt.s32.totalorder %s277_s17, %s277_s17 }
  0x6a   : > { %p2447_p9 = scmp.lt.s32.totalorder %s2438_s20, %s2438_s20 }
  0x6b   : > { %p2441_p1 = pnand %p2439_p5, %p3257_p12 }
  0x6c   : > { %p2448_p0 = por %p2447_p9, %p2446_p10 }
  0x6d   : > { %p2442_p6 = pneg %p2441_p1 }
  0x6f   : > { %p2449_p8 = pnand %p2448_p0, %p2442_p6 }
  0x71   : > { %2452 = shalt.err (!%p2449_p8)
}
  0x72   : > { %s3258_s1 = smov 8   ;;  %s3259_s12 = smov 128  }
  0x73   : > { %2275 = dma.hbm_to_vmem [thread:$0]  (!%p3255_p4), %s3216_s4, 512, %s277_s17, [#allocation9], %s3259_s12, %s3259_s12, %s3258_s1  }
  0x74   : > { %s2872_s21 = scalar_lea.hbm %s3212_s0, %s2795_s26  ;;  %s300_s16 = scalar_lea.vmem [#allocation2], %s2799_s10 }
  0x75   : > { %s307_s18 = sshll.u32 %s300_s16, 4  ;;  %s3260_s30 = sand.u32 1, %s2615_s29   ;;  %s308_s18 = int_to_ptr.vmem [resolvable:$true] %s307_s18 }
  0x76   : > { %s297_s20 = scalar_lea.sflag [#allocation3], %s3260_s30  ;;  %s2453_s22 = scalar_lea.hbm %s2872_s21, 128 }
  0x77   : > { %p2454_p9 = scmp.ne.s32.totalorder %s2872_s21, %s2453_s22  ;;  %p3261_p0 = scmp.ne.s32.totalorder %s3254_s23, 0 }
  0x78   : > { %s2458_s12 = scalar_lea.hbm %s3212_s0, 256  ;;  %p2459_p4 = scmp.lt.u32.totalorder %s2872_s21, %s3212_s0 }
  0x79   : > { %p2456_p11 = pnand %p2454_p9, %p3261_p0  ;;  %p2460_p7 = scmp.lt.u32.totalorder %s2458_s12, %s2453_s22 }
  0x7a   : > { %p2462_p3 = scmp.lt.u32.totalorder %s2453_s22, %s2872_s21 }
  0x7b   : > { %p2457_p13 = pneg %p2456_p11  ;;  %p2461_p2 = por %p2460_p7, %p2459_p4 }
  0x7d   : > { %p2463_p5 = por %p2462_p3, %p2461_p2 }
  0x7f   : > { %p2464_p12 = pnand %p2463_p5, %p2457_p13 }
  0x81   : > { %2467 = shalt.err (!%p2464_p12)
}
  0x82   : > { %s2468_s19 = scalar_lea.vmem %s308_s18, 128  ;;  %s2626_s16 = smov [#allocation2]  }
  0x83   : > { %p2469_p1 = scmp.ne.s32.totalorder %s308_s18, %s2468_s19  ;;  %s2473_s30 = sshll.u32 %s2626_s16, 4  ;;  %s2474_s30 = int_to_ptr.vmem [resolvable:$false] %s2473_s30 }
  0x84   : > { %s2475_s17 = scalar_lea.vmem %s2474_s30, 256  ;;  %p2476_p8 = scmp.lt.s32.totalorder %s308_s18, %s2474_s30 }
  0x85   : > { %p2471_p6 = pnand %p2469_p1, %p3261_p0  ;;  %p2477_p9 = scmp.lt.s32.totalorder %s2475_s17, %s2468_s19 }
  0x87   : > { %p2472_p10 = pneg %p2471_p6  ;;  %p2478_p11 = por %p2477_p9, %p2476_p8 }
  0x89   : > { %p2479_p4 = pnand %p2478_p11, %p2472_p10 }
  0x8b   : > { %2482 = shalt.err (!%p2479_p4)
}
  0x8c   : > { %p3262_p7 = scmp.ne.s32.totalorder %s3252_s15, 0  ;;  %s2898_s12 = scalar_lea.hbm %s3214_s2, %s2795_s26 }
  0x8d   : > { %s336_s3 = scalar_lea.vmem [#allocation7], %s2799_s10  ;;  %s2483_s19 = scalar_lea.hbm %s2898_s12, 128 }
  0x8e   : > { %2279 = dma.hbm_to_vmem [thread:$0]  (!%p3262_p7), %s2872_s21, 128, %s308_s18, %s297_s20  }
  0x8f   : > { %s343_s14 = sshll.u32 %s336_s3, 4  ;;  %p2484_p13 = scmp.ne.s32.totalorder %s2898_s12, %s2483_s19  ;;  %s344_s14 = int_to_ptr.vmem [resolvable:$true] %s343_s14 }
  0x90   : > { %s2488_s21 = scalar_lea.hbm %s3214_s2, 256  ;;  %p2489_p5 = scmp.lt.u32.totalorder %s2898_s12, %s3214_s2 }
  0x91   : > { %p2486_p2 = pnand %p2484_p13, %p3261_p0  ;;  %p2490_p12 = scmp.lt.u32.totalorder %s2488_s21, %s2483_s19 }
  0x92   : > { %p2492_p6 = scmp.lt.u32.totalorder %s2483_s19, %s2898_s12 }
  0x93   : > { %p2487_p3 = pneg %p2486_p2  ;;  %p2491_p1 = por %p2490_p12, %p2489_p5 }
  0x95   : > { %p2493_p10 = por %p2492_p6, %p2491_p1 }
  0x97   : > { %p2494_p8 = pnand %p2493_p10, %p2487_p3 }
  0x99   : > { %2497 = shalt.err (!%p2494_p8)
}
  0x9a   : > { %s2498_s26 = scalar_lea.vmem %s344_s14, 128  ;;  %s2627_s10 = smov [#allocation7]  }
  0x9b   : > { %p2499_p9 = scmp.ne.s32.totalorder %s344_s14, %s2498_s26  ;;  %s2503_s17 = sshll.u32 %s2627_s10, 4  ;;  %s2504_s17 = int_to_ptr.vmem [resolvable:$false] %s2503_s17 }
  0x9c   : > { %s2505_s22 = scalar_lea.vmem %s2504_s17, 256  ;;  %p2506_p13 = scmp.lt.s32.totalorder %s344_s14, %s2504_s17 }
  0x9d   : > { %p2501_p11 = pnand %p2499_p9, %p3261_p0  ;;  %p2507_p2 = scmp.lt.s32.totalorder %s2505_s22, %s2498_s26 }
  0x9f   : > { %p2502_p4 = pneg %p2501_p11  ;;  %p2508_p7 = por %p2507_p2, %p2506_p13 }
  0xa1   : > { %p2509_p5 = pnand %p2508_p7, %p2502_p4 }
  0xa3   : > { %2512 = shalt.err (!%p2509_p5)
}
  0xa4   : > { %p3263_p12 = scmp.ne.s32.totalorder %s3252_s15, 0  ;;  %p3264_p3 = scmp.ne.s32.totalorder %s3245_s13, 0 }
  0xa5   : > { %s2922_s23 = sand.u32 (!%p3264_p3), 1, %s2611_s28   ;;  %p3265_p0 = scmp.ne.s32.totalorder (!%p3264_p3), %s3242_s11, 0 }
  0xa6   : > { %2285 = dma.hbm_to_vmem [thread:$0]  (!%p3263_p12), %s2898_s12, 128, %s344_s14, %s2815_s25  }
  0xa7   : > { %352 = sbr.rel (%p3264_p3) target bundleno = 2134 (0x856), region = 48  ;;  %s2925_s1 = sshll.u32 (!%p3264_p3), %s2922_s23, 3 }
  0xa8   : > { %s355_s3 = scalar_lea.sflag (!%p3264_p3), [#allocation3], %s2922_s23  ;;  %s358_s19 = scalar_lea.vmem (!%p3264_p3), [#allocation2], %s2925_s1 }
  0xae   : > { %2586 = dma.done.wait (%p3265_p0), %s355_s3, 128  }
  0xaf   : > { %2588 = vsyncadd (%p3265_p0), %s355_s3, 4294967168  ;;  %s363_s13 = sand.u32 1, %s2710_s9   ;;  %s367_s15 = scalar_lea.vmem [#allocation5], %s2925_s1 }
  0xb0   : > { %s364_s25 = scalar_lea.sflag [#allocation6], %s363_s13 }
  0xb1   : > { %2590 = dma.done.wait (%p3265_p0), %s364_s25, 256  }
  0xb2   : > { %2592 = vsyncadd (%p3265_p0), %s364_s25, 4294967040  ;;  %s376_s12 = scalar_lea.vmem [#allocation7], %s2925_s1  ;;  %p3266_p7 = scmp.eq.s32.totalorder %s2710_s9, 0 }
  0xb4   : > { %2594 = dma.done.wait (%p3266_p7), [#allocation9], 1024   ;;  %p3267_p1 = pmov %p3266_p7 }
  0xb5   : > { %v2628_v0 = vmov 0.0|0.0   ;;  %vm2629_vm0 = vmmov 0   ;;  %v2630_v1 = vmov 0.0   ;;  %v435_v2 = vld [vmem:[#allocation8] sm:$0xff]  ;;  %v436_v3 = vld [vmem:[#allocation8 + $0x8] sm:$0xff]  ;;  %v437_v4 = vld [vmem:[#allocation8 + $0x10] sm:$0xff]  ;;  %v544_v23 = vlaneseq }
  0xb6   : > { %2596 = vsyncadd (%p3267_p1), [#allocation9], 4294966272  ;;  %2239 = vmatprep.subr.bf16.mxu0 %v2628_v0  ;;  %2179 = vmatprep.mubr.msk.f32.mxu0 %vm2629_vm0, %v2630_v1  ;;  %v2240_v5 = vpack.c.bf16 %v436_v3, %v435_v2  ;;  %v438_v6 = vld [vmem:[#allocation8 + $0x18] sm:$0xff]  ;;  %vm439_vm1 = vcmask 261120   ;;  %v433_v9 = vld [vmem:[%s367_s15] sm:$0xff]  ;;  %s2631_s11 = smov 104  }
  0xb7   : > { %2188 = vmatprep.subr.mxu1 %v2630_v1  ;;  %2190 = vmatprep.mubr.msk.f32.mxu1 %vm2629_vm0, %v2630_v1  ;;  %v2243_v7 = vpack.c.bf16 %v438_v6, %v437_v4  ;;  %v2951_v8 = vld [vmem:[%s358_s19] sm:$0xff]  ;;  %s2632_s14 = smov 120   ;;  %s2633_s16 = smov 112   ;;  %v2635_v21 = vmov 1983009808   ;;  %v545_v27 = vshrl.u32 %v544_v23, 7 }
  0xb8   : > { %2241 = vmatpush3.bf16.msra.mxu0 %v2240_v5  ;;  %v434_v11 = vld [vmem:[%s376_s12] sm:$0xff]  ;;  %s2634_s30 = smov 96   ;;  %v542_v22 = vunpack.c.l.s4 %v2635_v21  ;;  %v2636_v24 = vmov 1934713408   ;;  %vm985_vm2 = vcmask 64512   ;;  %s2637_s21 = smov 64  }
  0xb9   : > { %2242 = vmatprep.subr.bf16.mxu0 %v2628_v0  ;;  %v574_v25 = vunpack.c.l.s4 %v2636_v24  ;;  %s2108_s18 = sshll.u32 %s2922_s23, 5  ;;  %s2638_s26 = smov 16   ;;  %vm1779_vm3 = vcmask 130048   ;;  %vm1781_vm4 = vcmask 195584  }
  0xba   : > { %v543_v26 = vunpack.c.0.s8 %v542_v22  ;;  %s3065_s20 = scalar_lea.vmem [#allocation12], %s2108_s18  ;;  %s2639_s10 = smov 8  }
  0xbb   : > { %v575_v30 = vunpack.c.0.s8 %v574_v25  ;;  %s2640_s17 = smov 24   ;;  %s2142_s22 = sshll.u32 %s2710_s9, 9 }
  0xbc   : > { %2244 = vmatpush3.bf16.msra.mxu0 %v2243_v7  ;;  %v2976_v31 = vsub.s32 %v543_v26, %v545_v27  ;;  %s1923_s3 = sshll.u32 %s3065_s20, 4  ;;  %s3127_s25 = scalar_lea.hbm %s3220_s8, %s2142_s22  ;;  %s3129_s3 = int_to_ptr.vmem [resolvable:$true] %s1923_s3 }
  0xbd   : > { %2218 = vmatprep.subr.mxu0 %v2630_v1  ;;  %v2978_v38 = vsub.s32 %v575_v30, %v545_v27  ;;  %s1897_s15 = scalar_lea.sflag [#allocation13], %s2922_s23  ;;  %s2513_s12 = scalar_lea.vmem %s3129_s3, 512 }
  0xbe   : > { %p2514_p6 = scmp.ne.s32.totalorder %s3129_s3, %s2513_s12  ;;  %p3268_p10 = scmp.ne.s32.totalorder %s3251_s24, 0 }
  0xbf   : > { %2180 = vmatmul.mubr.msk.f32.vlgmr.msra.gmra.mrb[0].mxu0 %vm439_vm1, %v2951_v8 }
  0xc0   : > { %2182 = vmatprep.mubr.msk.f32.mxu0 %vm2629_vm0, %v2630_v1  ;;  %p2515_p8 = pnand %p2514_p6, %p3268_p10 }
  0xc2   : > { %p2516_p9 = pneg %p2515_p8 }
  0xc3   : > { %2183 = vmatmul.mubr.msk.f32.gmra.mrb[2].mxu0 %vm439_vm1, %v433_v9 }
  0xc4   : > { %2185 = vmatprep.mubr.msk.f32.mxu0 %vm2629_vm0, %v2630_v1 }
  0xc7   : > { %2186 = vmatmul.mubr.msk.f32.gmra.mrb[4].mxu0 %vm439_vm1, %v434_v11 }
  0xc8   : > { %2220 = vmatprep.mubr.msk.f32.mxu0 %vm2629_vm0, %v2630_v1 }
 0x192   : > { %v2961_v10 = vpop.f32.mrb[0].mxu0 }
 0x193   : > { %v2181_v12 = vpop.f32.mrb[1].mxu0 }
 0x196   : > { %v520_v13 = vpop.f32.mrb[2].mxu0 }
 0x197   : > { %680 = vrot.lane.b32.xlu1 %v520_v13, %s2631_s11  ;;  %676 = vrot.lane.b32.xlu0 %v520_v13, %s2632_s14  ;;  %v2184_v14 = vpop.f32.mrb[3].mxu0 }
 0x19a   : > { %v2973_v18 = vpop.f32.mrb[4].mxu0 }
 0x19b   : > { %530 = vrot.lane.b32.xlu1 %v2961_v10, %s2632_s14  ;;  %678 = vrot.lane.b32.xlu0 %v520_v13, %s2633_s16  ;;  %v2187_v19 = vpop.f32.mrb[5].mxu0 }
 0x19f   : > { %682 = vrot.lane.b32.xlu1 %v520_v13, %s2634_s30 }
 0x209   : > { %v677_v15 = vpop.permute.xlu0 %676  ;;  %v681_v16 = vpop.permute.xlu1 %680 }
 0x20a   : > { %684 = vrot.lane.b32.xlu0 %v677_v15, %s2634_s30 }
 0x20d   : > { %v679_v17 = vpop.permute.xlu0 %678  ;;  %v531_v20 = vpop.permute.xlu1 %530 }
 0x20e   : > { %688 = vrot.lane.b32.xlu0 %v681_v16, %s2634_s30  ;;  %686 = vrot.lane.b32.xlu1 %v679_v17, %s2634_s30 }
 0x211   : > { %v683_v28 = vpop.permute.xlu1 %682 }
 0x212   : > { %533 = vrot.lane.b32.xlu0 %v2961_v10, %s2633_s16  ;;  %536 = vrot.lane.b32.xlu1 %v2961_v10, %s2631_s11 }
 0x216   : > { %831 = vrot.lane.b32.xlu1 %v2973_v18, %s2632_s14 }
 0x27c   : > { %v685_v29 = vpop.permute.xlu0 %684 }
 0x280   : > { %v687_v32 = vpop.permute.xlu1 %686  ;;  %v689_v33 = vpop.permute.xlu0 %688 }
 0x281   : > { %v694_v34 = vcombine.low %v683_v28, %v687_v32  ;;  %v695_v35 = vcombine.high %v683_v28, %v687_v32  ;;  %v710_v36 = vcombine.low %v685_v29, %v689_v33  ;;  %v711_v37 = vcombine.high %v685_v29, %v689_v33 }
 0x283   : > { %v702_v39 = vrot.slane %v694_v34, %v2976_v31  ;;  %v709_v40 = vrot.slane %v695_v35, %v2976_v31  ;;  %v718_v41 = vrot.slane %v710_v36, %v2976_v31  ;;  %v725_v42 = vrot.slane %v711_v37, %v2976_v31 }
 0x284   : > { %v537_v43 = vpop.permute.xlu1 %536  ;;  %v534_v44 = vpop.permute.xlu0 %533 }
 0x285   : > { %v726_v45 = vcombine.low %v702_v39, %v718_v41  ;;  %v727_v46 = vcombine.high %v702_v39, %v718_v41  ;;  %v742_v47 = vcombine.low %v709_v40, %v725_v42  ;;  %v743_v48 = vcombine.high %v709_v40, %v725_v42 }
 0x286   : > { %v555_v49 = vcombine.low %v531_v20, %v537_v43  ;;  %v556_v50 = vcombine.high %v531_v20, %v537_v43  ;;  %v539_v51 = vcombine.low %v2961_v10, %v534_v44  ;;  %v540_v52 = vcombine.high %v2961_v10, %v534_v44 }
 0x287   : > { %v734_v53 = vrot.slane %v726_v45, %v2978_v38  ;;  %v741_v54 = vrot.slane %v727_v46, %v2978_v38  ;;  %v750_v55 = vrot.slane %v742_v47, %v2978_v38  ;;  %v757_v56 = vrot.slane %v743_v48, %v2978_v38 }
 0x288   : > { %v563_v57 = vrot.slane %v555_v49, %v2976_v31  ;;  %v570_v58 = vrot.slane %v556_v50, %v2976_v31  ;;  %v547_v59 = vrot.slane %v539_v51, %v2976_v31  ;;  %v554_v60 = vrot.slane %v540_v52, %v2976_v31 }
 0x289   : > { %v762_v61 = vcombine.low %v734_v53, %v741_v54  ;;  %v2114_v62 = vcombine.high %v734_v53, %v741_v54  ;;  %v778_v63 = vcombine.low %v750_v55, %v757_v56  ;;  %v2115_v2 = vcombine.high %v750_v55, %v757_v56 }
 0x28a   : > { %v571_v3 = vcombine.low %v547_v59, %v563_v57  ;;  %v572_v4 = vcombine.high %v547_v59, %v563_v57  ;;  %v587_v5 = vcombine.low %v554_v60, %v570_v58  ;;  %v588_v6 = vcombine.high %v554_v60, %v570_v58 }
 0x28b   : > { %v769_v7 = vrot.slane %v762_v61, %v2976_v31  ;;  %v777_v9 = vrot.slane %v2114_v62, %v2976_v31  ;;  %v785_v10 = vrot.slane %v778_v63, %v2976_v31  ;;  %v793_v11 = vrot.slane %v2115_v2, %v2976_v31  ;;  %v832_v63 = vpop.permute.xlu1 %831 }
 0x28c   : > { %v579_v12 = vrot.slane %v571_v3, %v2978_v38  ;;  %v586_v13 = vrot.slane %v572_v4, %v2978_v38  ;;  %v595_v14 = vrot.slane %v587_v5, %v2978_v38  ;;  %v602_v15 = vrot.slane %v588_v6, %v2978_v38 }
 0x28d   : > { %v794_v16 = vcombine.low %v769_v7, %v777_v9  ;;  %v810_v17 = vcombine.low %v785_v10, %v793_v11  ;;  %v795_v33 = vcombine.high %v769_v7, %v777_v9  ;;  %v811_v34 = vcombine.high %v785_v10, %v793_v11 }
 0x28e   : > { %v607_v19 = vcombine.low %v579_v12, %v586_v13  ;;  %v2112_v20 = vcombine.high %v579_v12, %v586_v13  ;;  %v623_v21 = vcombine.low %v595_v14, %v602_v15  ;;  %v2113_v22 = vcombine.high %v595_v14, %v602_v15 }
 0x28f   : > { %v802_v23 = vrot.slane %v794_v16, %v2978_v38  ;;  %v818_v24 = vrot.slane %v810_v17, %v2978_v38  ;;  %v809_v42 = vrot.slane %v795_v33, %v2978_v38  ;;  %v825_v43 = vrot.slane %v811_v34, %v2978_v38 }
 0x290   : > { %v614_v25 = vrot.slane %v607_v19, %v2976_v31  ;;  %v622_v26 = vrot.slane %v2112_v20, %v2976_v31  ;;  %v630_v27 = vrot.slane %v623_v21, %v2976_v31  ;;  %v638_v28 = vrot.slane %v2113_v22, %v2976_v31 }
 0x291   : > { %v826_v29 = vcombine.low %v802_v23, %v818_v24  ;;  %v827_v41 = vcombine.high %v802_v23, %v818_v24  ;;  %v828_v47 = vcombine.low %v809_v42, %v825_v43  ;;  %v829_v49 = vcombine.high %v809_v42, %v825_v43 }
 0x292   : > { %v639_v30 = vcombine.low %v614_v25, %v622_v26  ;;  %v655_v32 = vcombine.low %v630_v27, %v638_v28  ;;  %v640_v37 = vcombine.high %v614_v25, %v622_v26  ;;  %v656_v39 = vcombine.high %v630_v27, %v638_v28 }
 0x293   : > { %2189 = vmatpush3.xpose.msk.msra.mxu1 %vm985_vm2, %v826_v29 }
 0x294   : > { %2193 = vmatprep.subr.mxu1 %v2630_v1  ;;  %v647_v35 = vrot.slane %v639_v30, %v2978_v38  ;;  %v663_v36 = vrot.slane %v655_v32, %v2978_v38  ;;  %v654_v45 = vrot.slane %v640_v37, %v2978_v38  ;;  %v670_v46 = vrot.slane %v656_v39, %v2978_v38 }
 0x296   : > { %v671_v40 = vcombine.low %v647_v35, %v663_v36  ;;  %v672_v44 = vcombine.high %v647_v35, %v663_v36  ;;  %v673_v48 = vcombine.low %v654_v45, %v670_v46  ;;  %v674_v50 = vcombine.high %v654_v45, %v670_v46 }
 0x298   : > { %2191 = vmatmul.mubr.msk.f32.vlgmr.msra.gmra.mrb[0].mxu1 %vm985_vm2, %v671_v40 }
 0x299   : > { %2194 = vmatpush3.xpose.msk.msra.mxu1 %vm985_vm2, %v827_v41  ;;  %2195 = vmatprep.mubr.msk.f32.mxu1 %vm2629_vm0, %v2630_v1 }
 0x29a   : > { %2198 = vmatprep.subr.mxu1 %v2630_v1 }
 0x29c   : > { %2196 = vmatmul.mubr.msk.f32.vlgmr.msra.gmra.mrb[2].mxu1 %vm985_vm2, %v672_v44 }
 0x29d   : > { %2199 = vmatpush3.xpose.msk.msra.mxu1 %vm985_vm2, %v828_v47  ;;  %2200 = vmatprep.mubr.msk.f32.mxu1 %vm2629_vm0, %v2630_v1 }
 0x29e   : > { %2203 = vmatprep.subr.mxu1 %v2630_v1 }
 0x2a0   : > { %2201 = vmatmul.mubr.msk.f32.vlgmr.msra.gmra.mrb[4].mxu1 %vm985_vm2, %v673_v48 }
 0x2a1   : > { %2204 = vmatpush3.xpose.msk.msra.mxu1 %vm985_vm2, %v829_v49  ;;  %2205 = vmatprep.mubr.msk.f32.mxu1 %vm2629_vm0, %v2630_v1 }
 0x2a2   : > { %2208 = vmatprep.subr.mxu1 %v2630_v1 }
 0x2a4   : > { %2206 = vmatmul.mubr.msk.f32.vlgmr.msra.gmra.mrb[6].mxu1 %vm985_vm2, %v674_v50 }
 0x2a5   : > { %2210 = vmatprep.mubr.msk.f32.mxu1 %vm2629_vm0, %v2630_v1 }
 0x36b   : > { %v1058_v51 = vpop.f32.mrb[0].mxu1 }
 0x36c   : > { %v2192_v52 = vpop.f32.mrb[1].mxu1  ;;  %v1290_v53 = vsel %vm985_vm2, %v1058_v51, -inf }
 0x36d   : > { %1291 = vmax.xlane.f32.xlu0 %v1290_v53 }
 0x36f   : > { %v1134_v54 = vpop.f32.mrb[2].mxu1 }
 0x370   : > { %v2197_v55 = vpop.f32.mrb[3].mxu1  ;;  %v1293_v56 = vsel %vm985_vm2, %v1134_v54, -inf }
 0x371   : > { %1294 = vmax.xlane.f32.xlu1 %v1293_v56 }
 0x373   : > { %v1210_v57 = vpop.f32.mrb[4].mxu1 }
 0x374   : > { %v2202_v58 = vpop.f32.mrb[5].mxu1  ;;  %v1296_v59 = vsel %vm985_vm2, %v1210_v57, -inf }
 0x375   : > { %1297 = vmax.xlane.f32.xlu0 %v1296_v59 }
 0x377   : > { %v1286_v60 = vpop.f32.mrb[6].mxu1 }
 0x378   : > { %v2207_v61 = vpop.f32.mrb[7].mxu1  ;;  %v1299_v62 = vsel %vm985_vm2, %v1286_v60, -inf }
 0x379   : > { %1300 = vmax.xlane.f32.xlu0 %v1299_v62 }
 0x382   : > { %835 = vrot.lane.b32.xlu1 %v2973_v18, %s2631_s11  ;;  %s2641_s11 = smov [#allocation12]  }
 0x383   : > { %s2517_s14 = sshll.u32 %s2641_s11, 4  ;;  %s2518_s14 = int_to_ptr.vmem [resolvable:$false] %s2517_s14 }
 0x384   : > { %p2520_p11 = scmp.lt.s32.totalorder %s3129_s3, %s2518_s14 }
 0x386   : > { %839 = vrot.lane.b32.xlu1 %v832_v63, %s2637_s21 }
 0x38f   : > { %833 = vrot.lane.b32.xlu0 %v2973_v18, %s2633_s16  ;;  %s2519_s16 = scalar_lea.vmem %s2518_s14, 1024 }
 0x390   : > { %p2521_p4 = scmp.lt.s32.totalorder %s2519_s16, %s2513_s12 }
 0x392   : > { %p2522_p13 = por %p2521_p4, %p2520_p11 }
 0x393   : > { %837 = vrot.lane.b32.xlu0 %v2973_v18, %s2637_s21 }
 0x394   : > { %p2523_p2 = pnand %p2522_p13, %p2516_p9 }
 0x3fa   : > { %v1292_v2 = vpop.xlane.xlu0 %1291 }
 0x3fb   : > { %v1302_v3 = vsub.f32 %v1058_v51, %v1292_v2 }
 0x3fd   : > { %v1306_v4 = vmul.f32 1.442695, %v1302_v3 }
 0x3fe   : > { %v1295_v5 = vpop.xlane.xlu1 %1294 }
 0x3ff   : > { %2349 = vpow2.f32 %v1306_v4  ;;  %v1303_v11 = vsub.f32 %v1134_v54, %v1295_v5 }
 0x401   : > { %v1308_v13 = vmul.f32 1.442695, %v1303_v11 }
 0x402   : > { %v836_v6 = vpop.permute.xlu1 %835  ;;  %v1298_v7 = vpop.xlane.xlu0 %1297 }
 0x403   : > { %843 = vrot.lane.b32.xlu0 %v836_v6, %s2637_s21  ;;  %2351 = vpow2.f32 %v1308_v13  ;;  %v1304_v21 = vsub.f32 %v1210_v57, %v1298_v7 }
 0x405   : > { %v1310_v22 = vmul.f32 1.442695, %v1304_v21 }
 0x406   : > { %v1301_v12 = vpop.xlane.xlu0 %1300  ;;  %v840_v26 = vpop.permute.xlu1 %839 }
 0x407   : > { %v1305_v14 = vsub.f32 %v1286_v60, %v1301_v12 }
 0x409   : > { %v2350_v9 = vpop.eup %2349  ;;  %v1312_v15 = vmul.f32 1.442695, %v1305_v14 }
 0x40a   : > { %v1314_v10 = vsel %vm985_vm2, %v2350_v9, 0.0  ;;  %v834_v18 = vpop.permute.xlu0 %833 }
 0x40b   : > { %1315 = vadd.xlane.f32.xlu1 %v1314_v10  ;;  %2353 = vpow2.f32 %v1312_v15 }
 0x40c   : > { %2355 = vpow2.f32 %v1310_v22 }
 0x40d   : > { %v3044_v16 = vpop.eup %2351 }
 0x40e   : > { %v1317_v17 = vsel %vm985_vm2, %v3044_v16, 0.0  ;;  %v838_v25 = vpop.permute.xlu0 %837 }
 0x415   : > { %v3048_v19 = vpop.eup %2353 }
 0x416   : > { %v1323_v20 = vsel %vm985_vm2, %v3048_v19, 0.0  ;;  %v3052_v23 = vpop.eup %2355 }
 0x417   : > { %v1320_v24 = vsel %vm985_vm2, %v3052_v23, 0.0 }
 0x41c   : > { %841 = vrot.lane.b32.xlu1 %v834_v18, %s2637_s21 }
 0x422   : > { %1318 = vadd.xlane.f32.xlu0 %v1317_v17  ;;  %v1783_v17 = vld [vmem:[#allocation10] sm:$0xff] }
 0x426   : > { %1324 = vadd.xlane.f32.xlu0 %v1323_v20  ;;  %v1784_v20 = vld [vmem:[#allocation10 + $0x8] sm:$0xff] }
 0x427   : > { %v2246_v21 = vpack.c.bf16 %v1784_v20, %v1783_v17 }
 0x440   : > { %1321 = vadd.xlane.f32.xlu1 %v1320_v24 }
 0x475   : > { %v844_v27 = vpop.permute.xlu0 %843 }
 0x476   : > { %v865_v29 = vcombine.low %v840_v26, %v844_v27  ;;  %v866_v30 = vcombine.high %v840_v26, %v844_v27 }
 0x478   : > { %v873_v35 = vrot.slane %v865_v29, %v2976_v31  ;;  %v880_v36 = vrot.slane %v866_v30, %v2976_v31 }
 0x498   : > { %v1316_v28 = vpop.xlane.xlu1 %1315 }
 0x499   : > { %2357 = vrcp.f32 %v1316_v28 }
 0x49c   : > { %v842_v32 = vpop.permute.xlu1 %841 }
 0x49d   : > { %v849_v33 = vcombine.low %v838_v25, %v842_v32  ;;  %v850_v34 = vcombine.high %v838_v25, %v842_v32 }
 0x49f   : > { %v857_v37 = vrot.slane %v849_v33, %v2976_v31  ;;  %v864_v39 = vrot.slane %v850_v34, %v2976_v31 }
 0x4a1   : > { %v881_v40 = vcombine.low %v857_v37, %v873_v35  ;;  %v882_v41 = vcombine.high %v857_v37, %v873_v35  ;;  %v897_v42 = vcombine.low %v864_v39, %v880_v36  ;;  %v898_v43 = vcombine.high %v864_v39, %v880_v36 }
 0x4a3   : > { %v2358_v44 = vpop.eup %2357  ;;  %v889_v45 = vrot.slane %v881_v40, %v2978_v38  ;;  %v896_v46 = vrot.slane %v882_v41, %v2978_v38  ;;  %v905_v47 = vrot.slane %v897_v42, %v2978_v38  ;;  %v912_v48 = vrot.slane %v898_v43, %v2978_v38  ;;  %v1785_v41 = vld [vmem:[#allocation10 + $0x10] sm:$0xff]  ;;  %v1786_v42 = vld [vmem:[#allocation10 + $0x18] sm:$0xff] }
 0x4a4   : > { %v1330_v49 = vmul.f32 %v2358_v44, %v2350_v9 }
 0x4a5   : > { %v917_v50 = vcombine.low %v889_v45, %v896_v46  ;;  %v2116_v51 = vcombine.high %v889_v45, %v896_v46  ;;  %v933_v52 = vcombine.low %v905_v47, %v912_v48  ;;  %v2117_v53 = vcombine.high %v905_v47, %v912_v48 }
 0x4a6   : > { %1334 = vst.msk [vmem:[%s3065_s20] sm:$0xff] %vm985_vm2, %v1330_v49  ;;  %v2249_v47 = vpack.c.bf16 %v1786_v42, %v1785_v41 }
 0x4a7   : > { %v924_v54 = vrot.slane %v917_v50, %v2976_v31  ;;  %v932_v55 = vrot.slane %v2116_v51, %v2976_v31  ;;  %v940_v56 = vrot.slane %v933_v52, %v2976_v31  ;;  %v948_v57 = vrot.slane %v2117_v53, %v2976_v31 }
 0x4a9   : > { %v949_v58 = vcombine.low %v924_v54, %v932_v55  ;;  %v965_v59 = vcombine.low %v940_v56, %v948_v57  ;;  %v950_v60 = vcombine.high %v924_v54, %v932_v55  ;;  %v966_v61 = vcombine.high %v940_v56, %v948_v57 }
 0x4ab   : > { %v957_v62 = vrot.slane %v949_v58, %v2978_v38  ;;  %v973_v63 = vrot.slane %v965_v59, %v2978_v38  ;;  %v964_v2 = vrot.slane %v950_v60, %v2978_v38  ;;  %v980_v3 = vrot.slane %v966_v61, %v2978_v38 }
 0x4ad   : > { %v981_v4 = vcombine.low %v957_v62, %v973_v63  ;;  %v983_v5 = vcombine.low %v964_v2, %v980_v3  ;;  %v982_v7 = vcombine.high %v957_v62, %v973_v63  ;;  %v984_v12 = vcombine.high %v964_v2, %v980_v3 }
 0x4af   : > { %v1319_v6 = vpop.xlane.xlu0 %1318  ;;  %2209 = vmatpush3.msra.mxu1 %v981_v4  ;;  %2219 = vmatpush3.msra.mxu0 %v983_v5 }
 0x4b0   : > { %2359 = vrcp.f32 %v1319_v6  ;;  %2211 = vmatmul.mubr.msk.f32.vlgmr.msra.gmra.mrb[8].mxu1 %vm985_vm2, %v1330_v49  ;;  %2213 = vmatprep.subr.mxu1 %v2630_v1 }
 0x4b1   : > { %2214 = vmatpush3.msra.mxu1 %v982_v7  ;;  %2215 = vmatprep.mubr.msk.f32.mxu1 %vm2629_vm0, %v2630_v1 }
 0x4b2   : > { %2223 = vmatprep.subr.mxu1 %v2630_v1  ;;  %2245 = vmatprep.subr.bf16.mxu0 %v2628_v0 }
 0x4b3   : > { %v1325_v9 = vpop.xlane.xlu0 %1324 }
 0x4b4   : > { %2361 = vrcp.f32 %v1325_v9 }
 0x4ba   : > { %v2360_v10 = vpop.eup %2359 }
 0x4bb   : > { %v1331_v11 = vmul.f32 %v2360_v10, %v3044_v16 }
 0x4bd   : > { %1335 = vst.msk [vmem:[%s3065_s20 + $0x8] sm:$0xff] %vm985_vm2, %v1331_v11  ;;  %2216 = vmatmul.mubr.msk.f32.vlgmr.msra.gmra.mrb[10].mxu1 %vm985_vm2, %v1331_v11 }
 0x4be   : > { %v2362_v13 = vpop.eup %2361  ;;  %2224 = vmatpush3.msra.mxu1 %v984_v12  ;;  %2225 = vmatprep.mubr.msk.f32.mxu1 %vm2629_vm0, %v2630_v1 }
 0x4bf   : > { %v1333_v14 = vmul.f32 %v2362_v13, %v3048_v19 }
 0x4c1   : > { %1337 = vst.msk [vmem:[%s3065_s20 + $0x18] sm:$0xff] %vm985_vm2, %v1333_v14  ;;  %2226 = vmatmul.mubr.msk.f32.vlgmr.msra.gmra.mrb[12].mxu1 %vm985_vm2, %v1333_v14 }
 0x4cd   : > { %v1322_v15 = vpop.xlane.xlu1 %1321 }
 0x4ce   : > { %2363 = vrcp.f32 %v1322_v15 }
 0x4d8   : > { %v2364_v18 = vpop.eup %2363 }
 0x4d9   : > { %v1332_v16 = vmul.f32 %v2364_v18, %v3052_v23 }
 0x4db   : > { %1336 = vst.msk [vmem:[%s3065_s20 + $0x10] sm:$0xff] %vm985_vm2, %v1332_v16  ;;  %2221 = vmatmul.mubr.msk.f32.vlgmr.msra.gmra.mrb[6].mxu0 %vm985_vm2, %v1332_v16 }
 0x4dc   : > { %2236 = vmatprep.mubr.msk.f32.mxu0 %vm2629_vm0, %v2630_v1  ;;  %2247 = vmatpush3.bf16.msra.mxu0 %v2246_v21 }
 0x4dd   : > { %2248 = vmatprep.subr.bf16.mxu0 %v2628_v0 }
 0x4e0   : > { %2250 = vmatpush3.bf16.msra.mxu0 %v2249_v47 }
 0x583   : > { %v1407_v19 = vpop.f32.mrb[8].mxu1 }
 0x584   : > { %v2212_v22 = vpop.f32.mrb[9].mxu1 }
 0x590   : > { %v1480_v24 = vpop.f32.mrb[10].mxu1 }
 0x591   : > { %v2217_v25 = vpop.f32.mrb[11].mxu1 }
 0x594   : > { %v1626_v26 = vpop.f32.mrb[12].mxu1 }
 0x595   : > { %v1646_v27 = vcombine.low %v1480_v24, %v1626_v26  ;;  %v1647_v23 = vcombine.high %v1480_v24, %v1626_v26  ;;  %v2227_v28 = vpop.f32.mrb[13].mxu1 }
 0x597   : > { %v1654_v1 = vrot.slane %v1646_v27, %v2976_v31  ;;  %v1661_v34 = vrot.slane %v1647_v23, %v2976_v31 }
 0x5ae   : > { %v1553_v29 = vpop.f32.mrb[6].mxu0 }
 0x5af   : > { %v1630_v30 = vcombine.low %v1407_v19, %v1553_v29  ;;  %v1631_v32 = vcombine.high %v1407_v19, %v1553_v29  ;;  %v2222_v33 = vpop.f32.mrb[7].mxu0 }
 0x5b1   : > { %v1638_v35 = vrot.slane %v1630_v30, %v2976_v31  ;;  %v1645_v0 = vrot.slane %v1631_v32, %v2976_v31 }
 0x5b3   : > { %v1662_v36 = vcombine.low %v1638_v35, %v1654_v1  ;;  %v1663_v37 = vcombine.high %v1638_v35, %v1654_v1  ;;  %v1678_v39 = vcombine.low %v1645_v0, %v1661_v34  ;;  %v1679_v40 = vcombine.high %v1645_v0, %v1661_v34 }
 0x5b5   : > { %v1670_v43 = vrot.slane %v1662_v36, %v2978_v38  ;;  %v1677_v44 = vrot.slane %v1663_v37, %v2978_v38  ;;  %v1686_v45 = vrot.slane %v1678_v39, %v2978_v38  ;;  %v1693_v46 = vrot.slane %v1679_v40, %v2978_v38 }
 0x5b7   : > { %v1698_v48 = vcombine.low %v1670_v43, %v1677_v44  ;;  %v2130_v49 = vcombine.high %v1670_v43, %v1677_v44  ;;  %v1714_v50 = vcombine.low %v1686_v45, %v1693_v46  ;;  %v2131_v51 = vcombine.high %v1686_v45, %v1693_v46 }
 0x5b9   : > { %v1705_v52 = vrot.slane %v1698_v48, %v2976_v31  ;;  %v1713_v53 = vrot.slane %v2130_v49, %v2976_v31  ;;  %v1721_v54 = vrot.slane %v1714_v50, %v2976_v31  ;;  %v1729_v55 = vrot.slane %v2131_v51, %v2976_v31 }
 0x5bb   : > { %v1731_v56 = vcombine.high %v1705_v52, %v1713_v53  ;;  %v1747_v57 = vcombine.high %v1721_v54, %v1729_v55  ;;  %v1730_v58 = vcombine.low %v1705_v52, %v1713_v53  ;;  %v1746_v59 = vcombine.low %v1721_v54, %v1729_v55 }
 0x5bd   : > { %v1745_v60 = vrot.slane %v1731_v56, %v2978_v38  ;;  %v1761_v61 = vrot.slane %v1747_v57, %v2978_v38  ;;  %v1738_v62 = vrot.slane %v1730_v58, %v2978_v38  ;;  %v1754_v63 = vrot.slane %v1746_v59, %v2978_v38 }
 0x5bf   : > { %v1764_v2 = vcombine.low %v1745_v60, %v1761_v61  ;;  %v1763_v3 = vcombine.high %v1738_v62, %v1754_v63  ;;  %v1765_v4 = vcombine.high %v1745_v60, %v1761_v61  ;;  %v1762_v5 = vcombine.low %v1738_v62, %v1754_v63 }
 0x5c1   : > { %1771 = vrot.lane.b32.xlu1 %v1764_v2, %s2638_s26  ;;  %1767 = vrot.lane.b32.xlu0 %v1763_v3, %s2639_s10 }
 0x5c5   : > { %1775 = vrot.lane.b32.xlu1 %v1765_v4, %s2640_s17 }
 0x633   : > { %v1772_v31 = vpop.permute.xlu1 %1771  ;;  %v1768_v6 = vpop.permute.xlu0 %1767 }
 0x634   : > { %v1778_v7 = vsel %vm985_vm2, %v1762_v5, %v1768_v6 }
 0x635   : > { %v1780_v38 = vsel %vm1779_vm3, %v1778_v7, %v1772_v31 }
 0x637   : > { %v1776_v9 = vpop.permute.xlu1 %1775 }
 0x638   : > { %v1782_v10 = vsel %vm1781_vm4, %v1780_v38, %v1776_v9 }
 0x639   : > { %2237 = vmatmul.mubr.msk.f32.vlgmr.msra.gmra.mrb[8].mxu0 %vm439_vm1, %v1782_v10 }
 0x70c   : > { %v1856_v11 = vpop.f32.mrb[8].mxu0 }
 0x70d   : > { %v1857_v12 = vadd.f32 %v1856_v11, %v2951_v8  ;;  %v2238_v13 = vpop.f32.mrb[9].mxu0 }
 0x70f   : > { %v1860_v14 = vsel %vm439_vm1, %v1857_v12, 0.0 }
 0x710   : > { %1861 = vadd.xlane.f32.xlu0 %v1860_v14 }
 0x79d   : > { %v1862_v15 = vpop.xlane.xlu0 %1861 }
 0x79e   : > { %v1864_v18 = vmul.f32 0.03125, %v1862_v15 }
 0x7a0   : > { %v1865_v16 = vsub.f32 %v1857_v12, %v1864_v18 }
 0x7a2   : > { %v1866_v17 = vmul.f32 %v1865_v16, %v1865_v16 }
 0x7a4   : > { %v1867_v20 = vsel %vm439_vm1, %v1866_v17, 0.0 }
 0x7a5   : > { %1868 = vadd.xlane.f32.xlu1 %v1867_v20 }
 0x7a6   : > { %2526 = shalt.err (!%p2523_p2)
}
 0x7a7   : > { %s2527_s30 = scalar_lea.hbm %s3127_s25, 512  ;;  %s2531_s20 = scalar_lea.hbm %s3220_s8, 1024 }
 0x7a8   : > { %p2528_p5 = scmp.ne.s32.totalorder %s3127_s25, %s2527_s30  ;;  %p2532_p0 = scmp.lt.u32.totalorder %s3127_s25, %s3220_s8 }
 0x7a9   : > { %p2533_p7 = scmp.lt.u32.totalorder %s2531_s20, %s2527_s30  ;;  %p2535_p6 = scmp.lt.u32.totalorder %s2527_s30, %s3127_s25 }
 0x7aa   : > { %p2529_p12 = pnand %p2528_p5, %p3268_p10 }
 0x7ab   : > { %p2534_p1 = por %p2533_p7, %p2532_p0 }
 0x7ac   : > { %p2530_p3 = pneg %p2529_p12 }
 0x7ad   : > { %p2536_p8 = por %p2535_p6, %p2534_p1 }
 0x7af   : > { %p2537_p9 = pnand %p2536_p8, %p2530_p3 }
 0x7b1   : > { %2540 = shalt.err (!%p2537_p9)
}
 0x7b2   : > { %s2642_s22 = smov 128   ;;  %v2133_v24 = vld [vmem:[%s3217_s5] ss:$0 sm:$0xff]  ;;  %s2137_s14 = sshll.u32 %s2710_s9, 7 }
 0x7b3   : > { %2266 = dma.vmem_to_hbm [thread:$0]  (%p3268_p10), %s3129_s3, 512, %s3127_s25, %s1897_s15, %s2642_s22, %s2642_s22, %s2639_s10  }
 0x7b4   : > { %v2134_v26 = vld [vmem:[%s3218_s6] ss:$0 sm:$0xff]  ;;  %s424_s16 = scalar_lea.vmem [#allocation11], %s2925_s1  ;;  %s3167_s25 = scalar_lea.hbm %s3219_s7, %s2137_s14 }
 0x7b5   : > { %s1910_s30 = sshll.u32 %s424_s16, 4  ;;  %s1892_s15 = scalar_lea.sflag [#allocation4], %s2922_s23  ;;  %s3169_s30 = int_to_ptr.vmem [resolvable:$true] %s1910_s30 }
 0x7b6   : > { %s2541_s21 = scalar_lea.vmem %s3169_s30, 128  ;;  %s2643_s9 = smov [#allocation11]  }
 0x7b7   : > { %p2542_p11 = scmp.ne.s32.totalorder %s3169_s30, %s2541_s21  ;;  %s2545_s1 = sshll.u32 %s2643_s9, 4  ;;  %s2546_s1 = int_to_ptr.vmem [resolvable:$false] %s2545_s1 }
 0x7b8   : > { %s2547_s18 = scalar_lea.vmem %s2546_s1, 256  ;;  %p2548_p2 = scmp.lt.s32.totalorder %s3169_s30, %s2546_s1 }
 0x7b9   : > { %p2543_p4 = pnand %p2542_p11, %p3268_p10  ;;  %p2549_p5 = scmp.lt.s32.totalorder %s2547_s18, %s2541_s21 }
 0x7bb   : > { %p2544_p13 = pneg %p2543_p4  ;;  %p2550_p12 = por %p2549_p5, %p2548_p2 }
 0x7bd   : > { %p2551_p3 = pnand %p2550_p12, %p2544_p13 }
 0x832   : > { %v1869_v8 = vpop.xlane.xlu1 %1868 }
 0x833   : > { %v1870_v21 = vmul.f32 0.03125, %v1869_v8 }
 0x835   : > { %v1871_v19 = vadd.f32 1e-06, %v1870_v21 }
 0x837   : > { %2365 = vrsqrt.f32 %v1871_v19 }
 0x841   : > { %v2366_v22 = vpop.eup %2365 }
 0x842   : > { %v1873_v25 = vmul.f32 %v2366_v22, %v1865_v16 }
 0x844   : > { %v1881_v27 = vmul.f32 %v2133_v24, %v1873_v25 }
 0x846   : > { %v1889_v23 = vadd.f32 %v2134_v26, %v1881_v27 }
 0x848   : > { %1890 = vst.msk [vmem:[%s424_s16] sm:$0xff] %vm439_vm1, %v1889_v23 }
 0x849   : > { %2554 = shalt.err (!%p2551_p3)
}
 0x84a   : > { %s2555_s23 = scalar_lea.hbm %s3167_s25, 128  ;;  %s2559_s17 = scalar_lea.hbm %s3219_s7, 256 }
 0x84b   : > { %p2556_p0 = scmp.ne.s32.totalorder %s3167_s25, %s2555_s23  ;;  %p2560_p6 = scmp.lt.u32.totalorder %s3167_s25, %s3219_s7 }
 0x84c   : > { %p2561_p8 = scmp.lt.u32.totalorder %s2559_s17, %s2555_s23  ;;  %p2563_p11 = scmp.lt.u32.totalorder %s2555_s23, %s3167_s25 }
 0x84d   : > { %p2557_p7 = pnand %p2556_p0, %p3268_p10 }
 0x84e   : > { %p2562_p9 = por %p2561_p8, %p2560_p6 }
 0x84f   : > { %p2558_p1 = pneg %p2557_p7 }
 0x850   : > { %p2564_p4 = por %p2563_p11, %p2562_p9 }
 0x852   : > { %p2565_p13 = pnand %p2564_p4, %p2558_p1 }
 0x854   : > { %2568 = shalt.err (!%p2565_p13)
}
 0x855   : > { %2265 = dma.vmem_to_hbm [thread:$0]  (%p3268_p10), %s3169_s30, 128, %s3167_s25, %s1892_s15  }
 0x856 PF: > { %s3269_s13 = sld [smem:[#allocation20_spill]]  ;;  %s3270_s12 = sld [smem:[#allocation19_spill]] }
 0x857   : > { %s1938_s11 = sand.u32 1, %s2607_s27  }
 0x858   : > { %s1939_s14 = scalar_lea.sflag [#allocation4], %s1938_s11 }
 0x85c   : > { %p3271_p2 = scmp.ne.s32.totalorder %s3269_s13, 0  ;;  %p3272_p5 = scmp.ge.s32.totalorder %s3270_s12, 2 }
 0x85e   : > { %p2287_p12 = pnand %p3272_p5, %p3271_p2 }
 0x860   : > { %2598 = dma.done.wait (!%p2287_p12), %s1939_s14, 128  }
 0x861   : > { %2600 = vsyncadd (!%p2287_p12), %s1939_s14, 4294967168  ;;  %s1948_s16 = scalar_lea.sflag [#allocation13], %s1938_s11 }
 0x862   : > { %2602 = dma.done.wait (!%p2287_p12), %s1948_s16, 512  }
 0x863   : > { %2604 = vsyncadd (!%p2287_p12), %s1948_s16, 4294966784  ;;  %s3273_s30 = sld [smem:[#allocation21_spill]]  ;;  %s3274_s24 = sld [smem:[#allocation22_spill]] }
 0x864   : > { %s3275_s27 = smov %s2611_s28  ;;  %s3276_s28 = smov %s2615_s29 }
 0x869   : > { %p29_p10 = scmp.ge.s32.totalorder %s3273_s30, 4   ;;  %s3277_s29 = smov %s3274_s24 }
 0x86b   :  { %31 = sbr.rel (!%p29_p10) target bundleno = 13 (0xd), region = 142 }
 0x872   :  { %1953 = vsyncpa [#allocation3], 1 }
 0x873   :  { %1955 = vsyncpa [#allocation3 + $0x1], 1 }
 0x874   :  { %1956 = vsyncpa [#allocation6], 1 }
 0x875   :  { %1958 = vsyncpa [#allocation6 + $0x1], 1 }
 0x876   :  { %1959 = vsyncpa [#allocation9], 1 }
 0x877   :  { %1960 = vsyncpa [#allocation4], 1 }
 0x878   :  { %1962 = vsyncpa [#allocation4 + $0x1], 1 }
 0x879   :  { %1963 = vsyncpa [#allocation13], 1 }
 0x87a   :  { %1965 = vsyncpa [#allocation13 + $0x1], 1 }

</bundles_post_ra>
